<compile_context>
chip_gen: v5e
topology: v5e:2x2
jax: 0.10.0
libtpu: 0.0.40
codegen_flags: <defaults>
</compile_context>

<pallas_src>
import functools

import jax
import jax.numpy as jnp
from jax.experimental import pallas as pl
from jax.experimental.pallas import tpu as pltpu


def _round_up(x, m):
    return ((x + m - 1) // m) * m


_NEG_BIG = -1e30


# --------------------- fused GAT attention + aggregation + ReLU + Linear ---------------------
def gat_fused_kernel(
    a_dst_ref,    # [NL_T, 1]    f32   destination attention logits (wrapper precomputed)
    a_srcT_ref,   # [1, NA_T]    f32   source attention logits, lane-major
    adj_ref,      # [NL_T, NA_T] int8  adjacency (1 iff edge attribute->label exists)
    x_attr_ref,   # [NA_T, FA_P] bf16  source features (+ ones column at index fa)
    w_src_ref,    # [FA_P, HP]   bf16  source projection (+ unit row -> h[:, ones_col] == 1)
    gat_b_ref,    # [1, HP]      f32   GATConv bias
    w_lin_ref,    # [HP, OP]     bf16  final Linear weight
    b_lin_ref,    # [1, OP]      f32   final Linear bias
    out_ref,      # [NL_T, OP]   f32
    m_sc,         # [NL_T, 1]    f32   running max (floored at 0)
    acc_sc,       # [NL_T, HP]   f32   running weighted message sum (+ denominator column)
    *,
    ones_col,
):
    k = pl.program_id(1)

    @pl.when(k == 0)
    def _init():
        # Finite floor 0.0: masked logits (-1e30) underflow exp() to exactly 0, so no "* adj"
        # multiply is needed in the hot loop; the all-masked row is covered by the denom guard.
        m_sc[...] = jnp.zeros_like(m_sc)
        acc_sc[...] = jnp.zeros_like(acc_sc)

    # Recompute the source projection for this k tile (fa << hp: far cheaper in HBM bytes than
    # streaming a precomputed h_src; the MXU has plenty of slack — the step is VALU-bound).
    h = jnp.dot(x_attr_ref[...], w_src_ref[...],
                preferred_element_type=jnp.float32)           # [NA_T, HP]; h[:, ones_col] == 1

    raw = a_dst_ref[...] + a_srcT_ref[...]                    # [NL_T, NA_T] broadcast add
    e = jnp.maximum(raw, 0.2 * raw)                           # LeakyReLU(0.2)
    adj_f = adj_ref[...].astype(jnp.float32)
    e = jnp.where(adj_f > 0.0, e, _NEG_BIG)                   # compare + select mask

    m_prev = m_sc[...]
    m_new = jnp.maximum(m_prev, jnp.max(e, axis=-1, keepdims=True))
    p = jnp.exp(e - m_new)                                    # masked entries become exactly 0
    acc_sc[...] = jnp.exp(m_prev - m_new) * acc_sc[...] + jnp.dot(
        p.astype(jnp.bfloat16), h.astype(jnp.bfloat16),
        preferred_element_type=jnp.float32)
    m_sc[...] = m_new

    @pl.when(k == pl.num_programs(1) - 1)
    def _finalize():
        acc = acc_sc[...]
        denom = acc[:, ones_col:ones_col + 1]                 # softmax denom from the MXU
        denom = jnp.where(denom == 0.0, 1.0, denom)           # isolated dst node -> zero message
        inv = pl.reciprocal(denom, approx=True)               # EUP slot (otherwise idle here)
        inv = inv * (2.0 - denom * inv)                       # one Newton step ~ exact divide
        gat = jnp.maximum(acc * inv + gat_b_ref[...], 0.0)    # GATConv output + ReLU
        out_ref[...] = jnp.dot(gat.astype(jnp.bfloat16), w_lin_ref[...],
                               preferred_element_type=jnp.float32) + b_lin_ref[...]


# ----------------------------------------- wrapper -----------------------------------------
def hetero_gnn_forward(x_attr, x_label, adj, params, *, nl_tile=256, na_tile=1024):
    """adj: dense [Nl, Na] 0/1 connectivity (any dtype); streamed to the kernel as int8."""
    na, fa = x_attr.shape
    nl, fl = x_label.shape
    hidden = params["w_src"].shape[1]
    out_dim = params["w_lin"].shape[1]

    f32, bf16 = jnp.float32, jnp.bfloat16

    ones_col = hidden                               # spare lane column -> softmax denominator
    hp = _round_up(hidden + 1, 128)                 # lane-dense hidden (+1 spare column)
    op = _round_up(max(out_dim, 128), 128)          # lane-dense output (sliced off below)
    fa_p = _round_up(fa + 1, 8)                     # +1 ones column feeding h[:, ones_col]

    # Tiles: large by default (amortize per-step overhead), clamped to the rounded problem size.
    # Keep >=2 Nl tiles when possible so both TensorCores get work on v7x (near-free on 1-TC
    # v5e/v6e since only x_attr/a_srcT are re-read per extra i tile).
    na_tile = min(_round_up(na_tile, 128), _round_up(na, 128))
    nl_tile = min(_round_up(nl_tile, 8), _round_up(nl, 8))
    if nl > 8:
        nl_tile = min(nl_tile, _round_up((nl + 1) // 2, 8))

    na_p = _round_up(na, na_tile)
    nl_p = _round_up(nl, nl_tile)
    n_na = na_p // na_tile
    n_nl = nl_p // nl_tile

    # ---- wrapper-side precompute: attention logits (tiny f32 matvecs, done once) ----
    v_src = params["w_src"].astype(f32) @ params["att_src"].astype(f32).T     # [fa, 1]
    v_dst = params["w_dst"].astype(f32) @ params["att_dst"].astype(f32).T     # [fl, 1]
    a_srcT = jnp.zeros((1, na_p), f32).at[:, :na].set((x_attr.astype(f32) @ v_src).T)
    a_dst = jnp.zeros((nl_p, 1), f32).at[:nl].set(x_label.astype(f32) @ v_dst)

    # ---- padded / cast operands (zero padding is mathematically exact here) ----
    x_attr_aug = jnp.zeros((na_p, fa_p), bf16).at[:na, :fa].set(x_attr.astype(bf16))
    x_attr_aug = x_attr_aug.at[:, fa].set(1.0)                # ones column
    adj_p = jnp.zeros((nl_p, na_p), jnp.int8).at[:nl, :na].set((adj != 0).astype(jnp.int8))

    w_src_aug = jnp.zeros((fa_p, hp), bf16).at[:fa, :hidden].set(params["w_src"].astype(bf16))
    w_src_aug = w_src_aug.at[fa, ones_col].set(1.0)           # -> h[:, ones_col] == 1
    gat_b_p = jnp.zeros((1, hp), f32).at[:, :hidden].set(params["gat_b"].astype(f32))
    w_lin_p = jnp.zeros((hp, op), bf16).at[:hidden, :out_dim].set(params["w_lin"].astype(bf16))
    b_lin_p = jnp.zeros((1, op), f32).at[:, :out_dim].set(params["b_lin"].astype(f32))

    cost = pl.CostEstimate(
        flops=(n_nl * 2 * na_p * fa_p * hp          # per-i recompute of h = x_attr @ W_src
               + 2 * nl_p * na_p * hp               # p @ h
               + 2 * nl_p * hp * op                 # fused final Linear
               + 8 * nl_p * na_p),                  # elementwise score math
        transcendentals=nl_p * na_p + 3 * nl_p * n_na,
        bytes_accessed=(nl_p * na_p                                   # adj (int8)
                        + n_nl * (na_p * fa_p * 2 + na_p * 4)         # x_attr + a_srcT per i
                        + nl_p * 4 + nl_p * op * 4                    # a_dst + output
                        + fa_p * hp * 2 + hp * 4 + hp * op * 2 + op * 4))

    out_p = pl.pallas_call(
        functools.partial(gat_fused_kernel, ones_col=ones_col),
        out_shape=jax.ShapeDtypeStruct((nl_p, op), f32),
        grid_spec=pltpu.PrefetchScalarGridSpec(
            num_scalar_prefetch=0,
            grid=(n_nl, n_na),                # Nl tiles parallel (megacore), Na tiles = reduction
            in_specs=[
                pl.BlockSpec((nl_tile, 1), lambda i, k: (i, 0)),        # a_dst
                pl.BlockSpec((1, na_tile), lambda i, k: (0, k)),        # a_srcT (lane-major)
                pl.BlockSpec((nl_tile, na_tile), lambda i, k: (i, k)),  # adj (int8 stream)
                pl.BlockSpec((na_tile, fa_p), lambda i, k: (k, 0)),     # x_attr (bf16, fa << hp)
                pl.BlockSpec((fa_p, hp), lambda i, k: (0, 0)),          # w_src (resident)
                pl.BlockSpec((1, hp), lambda i, k: (0, 0)),             # gat bias
                pl.BlockSpec((hp, op), lambda i, k: (0, 0)),            # w_lin (bf16, resident)
                pl.BlockSpec((1, op), lambda i, k: (0, 0)),             # b_lin
            ],
            out_specs=pl.BlockSpec((nl_tile, op), lambda i, k: (i, 0)), # lane-dense output
            scratch_shapes=[
                pltpu.VMEM((nl_tile, 1), f32),     # running max m (floored at 0)
                pltpu.VMEM((nl_tile, hp), f32),    # running acc (incl. denominator column)
            ]),
        compiler_params=pltpu.CompilerParams(
            dimension_semantics=("parallel", "arbitrary"),
            vmem_limit_bytes=32 * 1024 * 1024),    # tiles leave big headroom, incl. v7x 64 MiB
        cost_estimate=cost,
    )(a_dst, a_srcT, adj_p, x_attr_aug, w_src_aug, gat_b_p, w_lin_p, b_lin_p)

    return out_p[:nl, :out_dim]


# ----------------------------------------- references -----------------------------------------
def reference_forward_f32(x_attr, x_label, adj, params):
    """Pure-f32 JAX reference for the module's forward semantics."""
    h_src = x_attr @ params["w_src"]
    h_dst = x_label @ params["w_dst"]
    a_src = jnp.sum(h_src * params["att_src"], axis=-1, keepdims=True)
    a_dst = jnp.sum(h_dst * params["att_dst"], axis=-1, keepdims=True)
    e = a_dst + a_src.T
    e = jnp.where(e > 0, e, 0.2 * e)
    mask = adj > 0
    e = jnp.where(mask, e, -1e30)
    p = jnp.where(mask, jnp.exp(e - jnp.max(e, axis=-1, keepdims=True)), 0.0)
    denom = jnp.sum(p, axis=-1, keepdims=True)
    denom = jnp.where(denom == 0.0, 1.0, denom)
    alpha = p / denom
    gat = jnp.maximum(alpha @ h_src + params["gat_b"], 0.0)
    return gat @ params["w_lin"] + params["b_lin"]


def reference_forward_parity(x_attr, x_label, adj, params):
    """Reference mirroring the kernel's numerics (f32 logits, m-floor 0, bf16 MXU operands)."""
    f32, bf16 = jnp.float32, jnp.bfloat16
    a_src = x_attr.astype(f32) @ (params["w_src"].astype(f32) @ params["att_src"].astype(f32).T)
    a_dst = x_label.astype(f32) @ (params["w_dst"].astype(f32) @ params["att_dst"].astype(f32).T)
    raw = a_dst + a_src.T
    e = jnp.maximum(raw, 0.2 * raw)
    e = jnp.where(adj != 0, e, _NEG_BIG)
    m = jnp.maximum(jnp.max(e, axis=-1, keepdims=True), 0.0)
    p = jnp.exp(e - m).astype(bf16)
    h_src = jnp.dot(x_attr.astype(bf16), params["w_src"].astype(bf16),
                    preferred_element_type=f32).astype(bf16)
    acc = jnp.dot(p, h_src, preferred_element_type=f32)
    denom = jnp.dot(p, jnp.ones((x_attr.shape[0], 1), bf16), preferred_element_type=f32)
    denom = jnp.where(denom == 0.0, 1.0, denom)
    gat = jnp.maximum(acc / denom + params["gat_b"], 0.0)
    return jnp.dot(gat.astype(bf16), params["w_lin"].astype(bf16),
                   preferred_element_type=f32) + params["b_lin"]


if __name__ == "__main__":
    N_ATTR, N_LABEL = 16, 8          # node counts for 'attribute' and 'label'
    F_ATTR, F_LABEL = 16, 8          # input feature dims (GATConv in_channels=(-1,-1))
    HIDDEN, OUT_DIM = 32, 8          # hidden_dim, out_dim
    N_EDGES = 40                     # edges attribute -> label (rev_to direction)

    key = jax.random.PRNGKey(0)
    ks = jax.random.split(key, 10)

    x_attr = jax.random.normal(ks[0], (N_ATTR, F_ATTR), dtype=jnp.float32)
    x_label = jax.random.normal(ks[1], (N_LABEL, F_LABEL), dtype=jnp.float32)

    # edge_index for ('attribute','rev_to','label'): row0 = src (attribute), row1 = dst (label)
    src = jax.random.randint(ks[2], (N_EDGES,), 0, N_ATTR)
    dst = jax.random.randint(ks[3], (N_EDGES,), 0, N_LABEL)
    src = jnp.concatenate([src, jnp.arange(N_LABEL) % N_ATTR])   # every label node gets >=1 edge
    dst = jnp.concatenate([dst, jnp.arange(N_LABEL)])
    adj = jnp.zeros((N_LABEL, N_ATTR), dtype=jnp.int8).at[dst, src].set(1)   # dense adjacency

    scale = 0.1
    params = {
        "w_src":   scale * jax.random.normal(ks[4], (F_ATTR, HIDDEN), dtype=jnp.float32),
        "w_dst":   scale * jax.random.normal(ks[5], (F_LABEL, HIDDEN), dtype=jnp.float32),
        "att_src": scale * jax.random.normal(ks[6], (1, HIDDEN), dtype=jnp.float32),
        "att_dst": scale * jax.random.normal(ks[7], (1, HIDDEN), dtype=jnp.float32),
        "gat_b":   jnp.zeros((1, HIDDEN), dtype=jnp.float32),
        "w_lin":   scale * jax.random.normal(ks[8], (HIDDEN, OUT_DIM), dtype=jnp.float32),
        "b_lin":   scale * jax.random.normal(ks[9], (1, OUT_DIM), dtype=jnp.float32),
    }

    out = jax.block_until_ready(hetero_gnn_forward(x_attr, x_label, adj, params))

    ref_tight = reference_forward_parity(x_attr, x_label, adj, params)
    ref_f32 = reference_forward_f32(x_attr, x_label, adj, params)

    assert out.shape == (N_LABEL, OUT_DIM)
    assert jnp.allclose(out, ref_tight, atol=2e-3, rtol=2e-3), "mismatch vs parity reference"
    assert jnp.allclose(out, ref_f32, atol=5e-2, rtol=5e-2), "mismatch vs f32 reference"

    print("KERNEL_OK")
</pallas_src>

<mosaic_0001>
module attributes {stable_mosaic.version = 11 : i64} {
  func.func @gat_fused_kernel(%arg0: i32, %arg1: i32, %arg2: memref<8x1xf32, #tpu.memory_space<vmem>>, %arg3: memref<1x128xf32, #tpu.memory_space<vmem>>, %arg4: memref<8x128xi8, #tpu.memory_space<vmem>>, %arg5: memref<128x24xbf16, #tpu.memory_space<vmem>>, %arg6: memref<24x128xbf16, #tpu.memory_space<vmem>>, %arg7: memref<1x128xf32, #tpu.memory_space<vmem>>, %arg8: memref<128x128xbf16, #tpu.memory_space<vmem>>, %arg9: memref<1x128xf32, #tpu.memory_space<vmem>>, %arg10: memref<8x128xf32, #tpu.memory_space<vmem>>, %arg11: memref<8x1xf32, #tpu.memory_space<vmem>>, %arg12: memref<8x128xf32, #tpu.memory_space<vmem>>) attributes {dimension_semantics = [#tpu.dimension_semantics<parallel>, #tpu.dimension_semantics<arbitrary>], iteration_bounds = array<i64: 1, 1>, scalar_prefetch = 0 : i64, scratch_operands = 2 : i64, tpu.core_type = #tpu.core_type<tc>, window_params = [{transform_indices = @transform_0, window_bounds = array<i64: 8, 1>}, {transform_indices = @transform_1, window_bounds = array<i64: 1, 128>}, {transform_indices = @transform_2, window_bounds = array<i64: 8, 128>}, {transform_indices = @transform_3, window_bounds = array<i64: 128, 24>}, {pipeline_mode = #tpu.pipeline_mode<synchronous>, transform_indices = @transform_4, window_bounds = array<i64: 24, 128>}, {pipeline_mode = #tpu.pipeline_mode<synchronous>, transform_indices = @transform_5, window_bounds = array<i64: 1, 128>}, {pipeline_mode = #tpu.pipeline_mode<synchronous>, transform_indices = @transform_6, window_bounds = array<i64: 128, 128>}, {pipeline_mode = #tpu.pipeline_mode<synchronous>, transform_indices = @transform_7, window_bounds = array<i64: 1, 128>}, {transform_indices = @transform_8, window_bounds = array<i64: 8, 128>}]} {
    %c0_i32 = arith.constant 0 : i32
    %0 = arith.cmpi eq, %arg1, %c0_i32 : i32
    %1 = arith.extui %0 : i1 to i32
    %c0_i32_0 = arith.constant 0 : i32
    %2 = arith.cmpi ne, %1, %c0_i32_0 : i32
    scf.if %2 {
      %cst_25 = arith.constant 0.000000e+00 : f32
      %41 = vector.broadcast %cst_25 : f32 to vector<8x1xf32>
      %c0_26 = arith.constant 0 : index
      %c0_27 = arith.constant 0 : index
      %42 = vector.load %arg11[%c0_26, %c0_27] : memref<8x1xf32, #tpu.memory_space<vmem>>, vector<8x1xf32>
      tpu.vector_store %arg11[%c0_26, %c0_27], %41 {strides = array<i32>} : memref<8x1xf32, #tpu.memory_space<vmem>>, vector<8x1xf32>,
      %cst_28 = arith.constant 0.000000e+00 : f32
      %43 = vector.broadcast %cst_28 : f32 to vector<8x128xf32>
      %c0_29 = arith.constant 0 : index
      %c0_30 = arith.constant 0 : index
      %44 = vector.load %arg12[%c0_29, %c0_30] : memref<8x128xf32, #tpu.memory_space<vmem>>, vector<8x128xf32>
      tpu.vector_store %arg12[%c0_29, %c0_30], %43 {strides = array<i32>} : memref<8x128xf32, #tpu.memory_space<vmem>>, vector<8x128xf32>,
    } else {
    }
    %c0 = arith.constant 0 : index
    %c0_1 = arith.constant 0 : index
    %3 = vector.load %arg5[%c0, %c0_1] : memref<128x24xbf16, #tpu.memory_space<vmem>>, vector<128x24xbf16>
    %c0_2 = arith.constant 0 : index
    %c0_3 = arith.constant 0 : index
    %4 = vector.load %arg6[%c0_2, %c0_3] : memref<24x128xbf16, #tpu.memory_space<vmem>>, vector<24x128xbf16>
    %cst = arith.constant dense<0.000000e+00> : vector<128x128xf32>
    %5 = tpu.matmul %3, %4, %cst {dimension_numbers = #tpu.dot_dimension_numbers<[1], [0], [0], [1], [0, 0, 1, 1], [], []>} : vector<128x24xbf16>, vector<24x128xbf16>, vector<128x128xf32> -> vector<128x128xf32>
    %c0_4 = arith.constant 0 : index
    %c0_5 = arith.constant 0 : index
    %6 = vector.load %arg2[%c0_4, %c0_5] : memref<8x1xf32, #tpu.memory_space<vmem>>, vector<8x1xf32>
    %c0_6 = arith.constant 0 : index
    %c0_7 = arith.constant 0 : index
    %7 = vector.load %arg3[%c0_6, %c0_7] : memref<1x128xf32, #tpu.memory_space<vmem>>, vector<1x128xf32>
    %8 = vector.broadcast %6 : vector<8x1xf32> to vector<8x128xf32>
    %9 = vector.broadcast %7 : vector<1x128xf32> to vector<8x128xf32>
    %10 = arith.addf %8, %9 : vector<8x128xf32>
    %cst_8 = arith.constant 2.000000e-01 : f32
    %11 = vector.broadcast %cst_8 : f32 to vector<8x128xf32>
    %12 = arith.mulf %11, %10 : vector<8x128xf32>
    %13 = arith.maximumf %10, %12 : vector<8x128xf32>
    %c0_9 = arith.constant 0 : index
    %c0_10 = arith.constant 0 : index
    %14 = vector.load %arg4[%c0_9, %c0_10] : memref<8x128xi8, #tpu.memory_space<vmem>>, vector<8x128xi8>
    %15 = arith.sitofp %14 : vector<8x128xi8> to vector<8x128xf32>
    %cst_11 = arith.constant 0.000000e+00 : f32
    %16 = vector.broadcast %cst_11 : f32 to vector<8x128xf32>
    %17 = arith.cmpf ogt, %15, %16 : vector<8x128xf32>
    %cst_12 = arith.constant -1.000000e+30 : f32
    %18 = vector.broadcast %cst_12 : f32 to vector<8x128xf32>
    %19 = arith.select %17, %13, %18 : vector<8x128xi1>, vector<8x128xf32>
    %c0_13 = arith.constant 0 : index
    %c0_14 = arith.constant 0 : index
    %20 = vector.load %arg11[%c0_13, %c0_14] : memref<8x1xf32, #tpu.memory_space<vmem>>, vector<8x1xf32>
    %cst_15 = arith.constant dense<0xFF800000> : vector<8xf32>
    %21 = vector.multi_reduction <maximumf>, %19, %cst_15 [1] : vector<8x128xf32> to vector<8xf32>
    %22 = vector.shape_cast %21 : vector<8xf32> to vector<8x1xf32>
    %23 = arith.maximumf %20, %22 : vector<8x1xf32>
    %24 = vector.broadcast %23 : vector<8x1xf32> to vector<8x128xf32>
    %25 = arith.subf %19, %24 : vector<8x128xf32>
    %26 = math.exp %25 : vector<8x128xf32>
    %27 = arith.subf %20, %23 : vector<8x1xf32>
    %28 = math.exp %27 : vector<8x1xf32>
    %c0_16 = arith.constant 0 : index
    %c0_17 = arith.constant 0 : index
    %29 = vector.load %arg12[%c0_16, %c0_17] : memref<8x128xf32, #tpu.memory_space<vmem>>, vector<8x128xf32>
    %30 = vector.broadcast %28 : vector<8x1xf32> to vector<8x128xf32>
    %31 = arith.mulf %30, %29 : vector<8x128xf32>
    %32 = arith.truncf %26 : vector<8x128xf32> to vector<8x128xbf16>
    %33 = arith.truncf %5 : vector<128x128xf32> to vector<128x128xbf16>
    %cst_18 = arith.constant dense<0.000000e+00> : vector<8x128xf32>
    %34 = tpu.matmul %32, %33, %cst_18 {dimension_numbers = #tpu.dot_dimension_numbers<[1], [0], [0], [1], [0, 0, 1, 1], [], []>} : vector<8x128xbf16>, vector<128x128xbf16>, vector<8x128xf32> -> vector<8x128xf32>
    %35 = arith.addf %31, %34 : vector<8x128xf32>
    %c0_19 = arith.constant 0 : index
    %c0_20 = arith.constant 0 : index
    %36 = vector.load %arg12[%c0_19, %c0_20] : memref<8x128xf32, #tpu.memory_space<vmem>>, vector<8x128xf32>
    tpu.vector_store %arg12[%c0_19, %c0_20], %35 {strides = array<i32>} : memref<8x128xf32, #tpu.memory_space<vmem>>, vector<8x128xf32>,
    %c0_21 = arith.constant 0 : index
    %c0_22 = arith.constant 0 : index
    %37 = vector.load %arg11[%c0_21, %c0_22] : memref<8x1xf32, #tpu.memory_space<vmem>>, vector<8x1xf32>
    tpu.vector_store %arg11[%c0_21, %c0_22], %23 {strides = array<i32>} : memref<8x1xf32, #tpu.memory_space<vmem>>, vector<8x1xf32>,
    %c0_i32_23 = arith.constant 0 : i32
    %38 = arith.cmpi eq, %arg1, %c0_i32_23 : i32
    %39 = arith.extui %38 : i1 to i32
    %c0_i32_24 = arith.constant 0 : i32
    %40 = arith.cmpi ne, %39, %c0_i32_24 : i32
    scf.if %40 {
      %c0_25 = arith.constant 0 : index
      %c0_26 = arith.constant 0 : index
      %41 = vector.load %arg12[%c0_25, %c0_26] : memref<8x128xf32, #tpu.memory_space<vmem>>, vector<8x128xf32>
      %42 = vector.extract_strided_slice %41 {offsets = [0, 32], sizes = [8, 1], strides = [1, 1]} : vector<8x128xf32> to vector<8x1xf32>
      %cst_27 = arith.constant 0.000000e+00 : f32
      %43 = vector.broadcast %cst_27 : f32 to vector<8x1xf32>
      %44 = arith.cmpf oeq, %42, %43 : vector<8x1xf32>
      %cst_28 = arith.constant 1.000000e+00 : f32
      %45 = vector.broadcast %cst_28 : f32 to vector<8x1xf32>
      %46 = arith.select %44, %45, %42 : vector<8x1xi1>, vector<8x1xf32>
      %47 = tpu.reciprocal %46 {approx = true} : vector<8x1xf32> -> vector<8x1xf32>
      %48 = arith.mulf %46, %47 : vector<8x1xf32>
      %cst_29 = arith.constant 2.000000e+00 : f32
      %49 = vector.broadcast %cst_29 : f32 to vector<8x1xf32>
      %50 = arith.subf %49, %48 : vector<8x1xf32>
      %51 = arith.mulf %47, %50 : vector<8x1xf32>
      %52 = vector.broadcast %51 : vector<8x1xf32> to vector<8x128xf32>
      %53 = arith.mulf %41, %52 : vector<8x128xf32>
      %c0_30 = arith.constant 0 : index
      %c0_31 = arith.constant 0 : index
      %54 = vector.load %arg7[%c0_30, %c0_31] : memref<1x128xf32, #tpu.memory_space<vmem>>, vector<1x128xf32>
      %55 = vector.broadcast %54 : vector<1x128xf32> to vector<8x128xf32>
      %56 = arith.addf %53, %55 : vector<8x128xf32>
      %cst_32 = arith.constant 0.000000e+00 : f32
      %57 = vector.broadcast %cst_32 : f32 to vector<8x128xf32>
      %58 = arith.maximumf %56, %57 : vector<8x128xf32>
      %59 = arith.truncf %58 : vector<8x128xf32> to vector<8x128xbf16>
      %c0_33 = arith.constant 0 : index
      %c0_34 = arith.constant 0 : index
      %60 = vector.load %arg8[%c0_33, %c0_34] : memref<128x128xbf16, #tpu.memory_space<vmem>>, vector<128x128xbf16>
      %cst_35 = arith.constant dense<0.000000e+00> : vector<8x128xf32>
      %61 = tpu.matmul %59, %60, %cst_35 {dimension_numbers = #tpu.dot_dimension_numbers<[1], [0], [0], [1], [0, 0, 1, 1], [], []>} : vector<8x128xbf16>, vector<128x128xbf16>, vector<8x128xf32> -> vector<8x128xf32>
      %c0_36 = arith.constant 0 : index
      %c0_37 = arith.constant 0 : index
      %62 = vector.load %arg9[%c0_36, %c0_37] : memref<1x128xf32, #tpu.memory_space<vmem>>, vector<1x128xf32>
      %63 = vector.broadcast %62 : vector<1x128xf32> to vector<8x128xf32>
      %64 = arith.addf %61, %63 : vector<8x128xf32>
      %c0_38 = arith.constant 0 : index
      %c0_39 = arith.constant 0 : index
      %65 = vector.load %arg10[%c0_38, %c0_39] : memref<8x128xf32, #tpu.memory_space<vmem>>, vector<8x128xf32>
      tpu.vector_store %arg10[%c0_38, %c0_39], %64 {strides = array<i32>} : memref<8x128xf32, #tpu.memory_space<vmem>>, vector<8x128xf32>,
    } else {
    }
    return
  }
  func.func @transform_0(%arg0: i32, %arg1: i32) -> (i32, i32) {
    %c0_i32 = arith.constant 0 : i32
    %c0_i32_0 = arith.constant 0 : i32
    return %arg0, %c0_i32 : i32, i32
  }
  func.func @transform_1(%arg0: i32, %arg1: i32) -> (i32, i32) {
    %c0_i32 = arith.constant 0 : i32
    %c0_i32_0 = arith.constant 0 : i32
    return %c0_i32, %arg1 : i32, i32
  }
  func.func @transform_2(%arg0: i32, %arg1: i32) -> (i32, i32) {
    %c0_i32 = arith.constant 0 : i32
    return %arg0, %arg1 : i32, i32
  }
  func.func @transform_3(%arg0: i32, %arg1: i32) -> (i32, i32) {
    %c0_i32 = arith.constant 0 : i32
    %c0_i32_0 = arith.constant 0 : i32
    return %arg1, %c0_i32 : i32, i32
  }
  func.func @transform_4(%arg0: i32, %arg1: i32) -> (i32, i32) {
    %c0_i32 = arith.constant 0 : i32
    %c0_i32_0 = arith.constant 0 : i32
    %c0_i32_1 = arith.constant 0 : i32
    return %c0_i32, %c0_i32_0 : i32, i32
  }
  func.func @transform_5(%arg0: i32, %arg1: i32) -> (i32, i32) {
    %c0_i32 = arith.constant 0 : i32
    %c0_i32_0 = arith.constant 0 : i32
    %c0_i32_1 = arith.constant 0 : i32
    return %c0_i32, %c0_i32_0 : i32, i32
  }
  func.func @transform_6(%arg0: i32, %arg1: i32) -> (i32, i32) {
    %c0_i32 = arith.constant 0 : i32
    %c0_i32_0 = arith.constant 0 : i32
    %c0_i32_1 = arith.constant 0 : i32
    return %c0_i32, %c0_i32_0 : i32, i32
  }
  func.func @transform_7(%arg0: i32, %arg1: i32) -> (i32, i32) {
    %c0_i32 = arith.constant 0 : i32
    %c0_i32_0 = arith.constant 0 : i32
    %c0_i32_1 = arith.constant 0 : i32
    return %c0_i32, %c0_i32_0 : i32, i32
  }
  func.func @transform_8(%arg0: i32, %arg1: i32) -> (i32, i32) {
    %c0_i32 = arith.constant 0 : i32
    %c0_i32_0 = arith.constant 0 : i32
    return %arg0, %c0_i32 : i32, i32
  }
}

</mosaic_0001>

<bundles_post_ra>
// kernel: tpu_custom_call.1
= control target key start
LH: loop header
LB: loop body
LE: loop exit
PB: predicated region body
PF: predicated region fallthrough
CT: control target
= control target key end

     0   :  { %v509_v2 = vmov 0   ;;  %vm131_vm0 = vcmask 1043456   ;;  %s640_s0 = inlined_call_operand.vmem [shape: f32[8,1], index: 0, kind: input, shape index: {}]   ;;  %s641_s1 = inlined_call_operand.vmem [shape: f32[1,128], index: 1, kind: input, shape index: {}]   ;;  %s642_s2 = inlined_call_operand.vmem [shape: s8[8,128], index: 2, kind: input, shape index: {}]   ;;  %s643_s3 = inlined_call_operand.vmem [shape: bf16[128,24], index: 3, kind: input, shape index: {}]   ;;  %s644_s4 = inlined_call_operand.vmem [shape: bf16[24,128], index: 4, kind: input, shape index: {}]   ;;  %s645_s5 = inlined_call_operand.vmem [shape: f32[1,128], index: 5, kind: input, shape index: {}]   ;;  %s646_s6 = inlined_call_operand.vmem [shape: bf16[128,128], index: 6, kind: input, shape index: {}]   ;;  %s647_s7 = inlined_call_operand.vmem [shape: f32[1,128], index: 7, kind: input, shape index: {}]   ;;  %s648_s8 = inlined_call_operand.hbm [shape: f32[8,128], index: 8, kind: output, shape index: {}]  }
   0x1   :  { %v184_v0 = vld [vmem:[%s640_s0] sm:$0xff]  ;;  %v56_v1 = vld [vmem:[%s644_s4 + $0x8] sm:$0xf]  ;;  %470 = vset.pattern.permute.xlu0 %v509_v2  ;;  %471 = vset.pattern.permute.xlu1 %v509_v2 }
   0x2   :  { %v102_v3 = vunpack.c.l.b16 %v56_v1  ;;  %188 = vperm.xlu0 %470, %v184_v0  }
   0x4   :  { %v104_v4 = vpack.c.b16 %v102_v3, %v102_v3 }
   0x5   :  { %13 = vsyncpa [#allocation5], 0  ;;  %v455_v6 = vld [vmem:[%s644_s4] sm:$0xff]  ;;  %vm106_vm1 = vcmask 195584   ;;  %v452_v9 = vld [vmem:[%s643_s3 + $0x28] sm:$0xff]  ;;  %vm35_vm3 = vcmask 7168  }
   0x6   :  { %v133_v5 = vsel %vm131_vm0, %v104_v4, 0  ;;  %v451_v7 = vld [vmem:[%s643_s3 + $0x20] sm:$0xff]  ;;  %v453_v10 = vld [vmem:[%s643_s3 + $0x30] sm:$0xff]  ;;  %v448_v11 = vld [vmem:[%s643_s3 + $0x8] sm:$0xff]  ;;  %v510_v28 = vmov 0.0   ;;  %v511_v60 = vmov 32  }
   0x7   :  { %464 = vmatpush.bf16.msra.mxu3 %v133_v5  ;;  %141 = vmatpush.bf16.msra.mxu0 %v133_v5  ;;  %v447_v8 = vld [vmem:[%s643_s3] sm:$0xff]  ;;  %v454_v12 = vld [vmem:[%s643_s3 + $0x38] sm:$0xff]  ;;  %v449_v13 = vld [vmem:[%s643_s3 + $0x10] sm:$0xff]  ;;  %36 = vst.msk [vmem:[#allocation2] sm:$0xff] %vm35_vm3, %v510_v28  ;;  %s512_s22 = smov [#allocation4]  }
   0x8   :  { %v197_v14 = vld [vmem:[%s642_s2] sm:$0x3]  ;;  %v450_v17 = vld [vmem:[%s643_s3 + $0x18] sm:$0xff]  ;;  %472 = vset.pattern.permute.xlu2 %v511_v60  ;;  %v462_v62 = vld [vmem:[%s646_s6 + $0x30] sm:$0xff]  ;;  %s360_s23 = sshll.u32 %s512_s22, 4  ;;  %s361_s23 = int_to_ptr.vmem [resolvable:$true] %s360_s23 }
   0x9   :  { %v198_v15 = vunpack.c.0.s8 %v197_v14  ;;  %v474_v16 = vld [vmem:[%s641_s1] ss:$0 sm:$0xff]  ;;  %v463_v61 = vld [vmem:[%s646_s6 + $0x38] sm:$0xff]  ;;  %v461_v63 = vld [vmem:[%s646_s6 + $0x28] sm:$0xff] }
   0xa   :  { %473 = vset.pattern.permute.xlu0 %v511_v60  ;;  %341 = vmatpush.bf16.msra.mxu2 %v463_v61  ;;  %v460_v1 = vld [vmem:[%s646_s6 + $0x20] sm:$0xff]  ;;  %v459_v4 = vld [vmem:[%s646_s6 + $0x18] sm:$0xff] }
   0xb   :  { %465 = vmatpush.bf16.msra.mxu3 %v455_v6  ;;  %142 = vmatpush.bf16.msra.mxu0 %v455_v6  ;;  %v199_v19 = vcvt.s32.f32 %v198_v15  ;;  %v456_v14 = vld [vmem:[%s646_s6] sm:$0xff] }
   0xc   :  { %v475_v15 = vld [vmem:[%s645_s5] ss:$0 sm:$0xff] }
   0xd   :  { %vm200_vm2 = vcmp.gt.f32.partialorder %v199_v19, 0.0 }
   0xe   :  { %411 = vmatmul.msk.bf16.vlgmr.msra.gmra.mxu3 %vm106_vm1, %v451_v7  ;;  %407 = vmatmul.msk.bf16.vlgmr.msra.gmra.mxu0 %vm106_vm1, %v447_v8  ;;  %v202_v39 = vld [vmem:[#allocation2] sm:$0xff]  ;;  %v458_v7 = vld [vmem:[%s646_s6 + $0x10] sm:$0xff] }
   0xf   :  { %342 = vmatpush.bf16.msra.mxu2 %v462_v62 }
  0x13   :  { %343 = vmatpush.bf16.msra.mxu2 %v461_v63 }
  0x17   :  { %344 = vmatpush.bf16.msra.mxu2 %v460_v1 }
  0x1b   :  { %345 = vmatpush.bf16.msra.mxu2 %v459_v4 }
  0x1e   :  { %412 = vmatmul.msk.bf16.gmra.mxu3 %vm106_vm1, %v452_v9  ;;  %408 = vmatmul.msk.bf16.gmra.mxu0 %vm106_vm1, %v448_v11 }
  0x1f   :  { %346 = vmatpush.bf16.msra.mxu2 %v458_v7 }
  0x2e   :  { %413 = vmatmul.msk.bf16.gmra.mxu3 %vm106_vm1, %v453_v10  ;;  %409 = vmatmul.msk.bf16.gmra.mxu0 %vm106_vm1, %v449_v13  ;;  %v457_v13 = vld [vmem:[%s646_s6 + $0x8] sm:$0xff]  ;;  %s362_s6 = sshll.u32 %s648_s8, 4  ;;  %s363_s6 = int_to_ptr.hbm [resolvable:$true] %s362_s6 }
  0x2f   :  { %347 = vmatpush.bf16.msra.mxu2 %v457_v13 }
  0x33   :  { %348 = vmatpush.bf16.msra.mxu2 %v456_v14 }
  0x3e   :  { %414 = vmatmul.msk.bf16.gmra.mxu3 %vm106_vm1, %v454_v12  ;;  %410 = vmatmul.msk.bf16.gmra.mxu0 %vm106_vm1, %v450_v17 }
  0x74   :  { %v189_v18 = vpop.permute.xlu0 %188 }
  0x75   :  { %v194_v20 = vadd.f32 %v474_v16, %v189_v18 }
  0x77   :  { %v195_v21 = vmul.f32 0.2, %v194_v20 }
  0x79   :  { %v196_v22 = vmax.f32 %v194_v20, %v195_v21  ;;  %v476_v21 = vld [vmem:[%s647_s7] ss:$0 sm:$0xff] }
  0x7b   :  { %v201_v23 = vsel %vm200_vm2, %v196_v22, -1e+30 }
  0x7c   :  { %203 = vmax.xlane.f32.xlu0 %v201_v23 }
  0x8b   :  { %v144_v26 = vpop.f32.mrf.mxu0 }
  0x91   :  { %v164_v24 = vpop.f32.mrf.mxu3 }
  0x93   :  { %v146_v29 = vpop.f32.mrf.mxu0 }
  0x94   :  { %v225_v54 = vpack.c.bf16 %v146_v29, %v144_v26 }
  0x99   :  { %v166_v25 = vpop.f32.mrf.mxu3 }
  0x9a   :  { %v229_v48 = vpack.c.bf16 %v166_v25, %v164_v24 }
  0x9b   :  { %v149_v31 = vpop.f32.mrf.mxu0 }
  0xa1   :  { %v169_v27 = vpop.f32.mrf.mxu3 }
  0xa3   :  { %v151_v33 = vpop.f32.mrf.mxu0 }
  0xa4   :  { %v226_v53 = vpack.c.bf16 %v151_v33, %v149_v31 }
  0xa9   :  { %v171_v30 = vpop.f32.mrf.mxu3 }
  0xaa   :  { %v230_v45 = vpack.c.bf16 %v171_v30, %v169_v27 }
  0xab   :  { %v154_v35 = vpop.f32.mrf.mxu0 }
  0xb1   :  { %v174_v32 = vpop.f32.mrf.mxu3 }
  0xb3   :  { %v156_v37 = vpop.f32.mrf.mxu0 }
  0xb4   :  { %v227_v52 = vpack.c.bf16 %v156_v37, %v154_v35 }
  0xb9   :  { %v176_v34 = vpop.f32.mrf.mxu3 }
  0xba   :  { %v231_v42 = vpack.c.bf16 %v176_v34, %v174_v32 }
  0xbb   :  { %v159_v47 = vpop.f32.mrf.mxu0 }
  0xc1   :  { %v179_v36 = vpop.f32.mrf.mxu3 }
  0xc3   :  { %v161_v50 = vpop.f32.mrf.mxu0 }
  0xc4   :  { %v228_v51 = vpack.c.bf16 %v161_v50, %v159_v47 }
  0xc9   :  { %v181_v38 = vpop.f32.mrf.mxu3 }
  0xca   :  { %v232_v40 = vpack.c.bf16 %v181_v38, %v179_v36 }
  0xcc   :  { %233 = vmatpush.bf16.msra.mxu1 %v232_v40 }
  0xd0   :  { %234 = vmatpush.bf16.msra.mxu1 %v231_v42 }
  0xd4   :  { %235 = vmatpush.bf16.msra.mxu1 %v230_v45 }
  0xd8   :  { %236 = vmatpush.bf16.msra.mxu1 %v229_v48 }
  0xdc   :  { %237 = vmatpush.bf16.msra.mxu1 %v228_v51 }
  0xe0   :  { %238 = vmatpush.bf16.msra.mxu1 %v227_v52 }
  0xe4   :  { %239 = vmatpush.bf16.msra.mxu1 %v226_v53 }
  0xe8   :  { %240 = vmatpush.bf16.msra.mxu1 %v225_v54 }
  0xef   :  { %v204_v41 = vpop.xlane.xlu0 %203 }
  0xf0   :  { %v205_v43 = vmax.f32 %v202_v39, %v204_v41 }
  0xf2   :  { %v214_v44 = vsub.f32 %v202_v39, %v205_v43  ;;  %249 = vst.msk [vmem:[#allocation2] sm:$0xff] %vm35_vm3, %v205_v43  ;;  %208 = vperm.xlu1 %471, %v205_v43  }
  0xf4   :  { %v215_v46 = vmul.f32 1.442695, %v214_v44 }
  0xf6   :  { %477 = vpow2.f32 %v215_v46 }
  0xfc   :  { %v478_v49 = vpop.eup %477 }
  0xfd   :  { %220 = vperm.xlu1 %471, %v478_v49  }
 0x164   :  { %v209_v55 = vpop.permute.xlu1 %208 }
 0x165   :  { %v211_v56 = vsub.f32 %v201_v23, %v209_v55 }
 0x167   :  { %v212_v57 = vmul.f32 1.442695, %v211_v56 }
 0x169   :  { %479 = vpow2.f32 %v212_v57 }
 0x16f   :  { %v480_v58 = vpop.eup %479  ;;  %v221_v0 = vpop.permute.xlu1 %220 }
 0x170   :  { %v224_v59 = vpack.c.bf16 %v480_v58, %v480_v58  ;;  %v223_v2 = vmul.f32 0.0, %v221_v0 }
 0x172   :  { %241 = vmatmul.bf16.vlgmr.msra.gmra.mxu1 %v224_v59 }
 0x1ef   :  { %v242_v3 = vpop.f32.mrf.mxu1 }
 0x1f0   :  { %v246_v5 = vadd.f32 %v242_v3, %v223_v2 }
 0x1f2   :  { %vm254_vm4 = vcmp.eq.f32.partialorder %v246_v5, 0.0 }
 0x1f3   :  { %v255_v6 = vsel %vm254_vm4, 1.0, %v246_v5 }
 0x1f4   :  { %481 = vrcp.f32 %v255_v6 }
 0x1f7   :  { %v244_v8 = vpop.f32.mrf.mxu1 }
 0x1fa   :  { %v482_v9 = vpop.eup %481 }
 0x1fb   :  { %v257_v10 = vmul.f32 %v482_v9, %v255_v6 }
 0x1fd   :  { %v258_v11 = vsub.f32 2.0, %v257_v10 }
 0x1ff   :  { %v259_v12 = vmul.f32 %v482_v9, %v258_v11 }
 0x201   :  { %262 = vperm.xlu2 %472, %v259_v12  }
 0x25b   :  { %v263_v16 = vpop.permute.xlu2 %262 }
 0x25c   :  { %v265_v17 = vmul.f32 %v263_v16, %v246_v5 }
 0x25e   :  { %v270_v18 = vadd.f32 %v475_v15, %v265_v17 }
 0x260   :  { %v271_v19 = vmax.f32 %v270_v18, 0.0 }
 0x262   :  { %v272_v20 = vpack.c.bf16 %v271_v19, %v271_v19 }
 0x264   :  { %349 = vmatmul.bf16.vlgmr.msra.gmra.mxu2 %v272_v20 }
 0x2e7   :  { %v350_v22 = vpop.f32.mrf.mxu2 }
 0x2e8   :  { %v351_v23 = vadd.f32 %v476_v21, %v350_v22 }
 0x2ea   :  { %354 = vst [vmem:[#allocation4] sm:$0xff] %v351_v23 }
 0x2eb   :  { %365 = dma.vmem_to_hbm [thread:$0]  %s361_s23, 128, %s363_s6, [#allocation5]  }
 0x2ef   :  { %v352_v24 = vpop.f32.mrf.mxu2 }
 0x2f0   :  { %507 = dma.done.wait [#allocation5], 128  }
 0x2f1   :  { %508 = vsyncadd [#allocation5], 4294967168 }
 0x2f2   :  { %370 = vsyncpa [#allocation5], 1 }

</bundles_post_ra>
